<compile_context>
chip_gen: v6e
topology: v6e:2x2x1
jax: 0.10.0
libtpu: 0.0.40
codegen_flags: <defaults>
</compile_context>

<pallas_src>
import math

import jax
import jax.numpy as jnp
from jax.experimental import pallas as pl
from jax.experimental.pallas import tpu as pltpu


def _lora_kernel(scale: float):
    """Kernel: o_tile = ((x_tile @ A) * scale) @ B_tile, xa cached in scratch."""

    def kernel(x_ref, a_ref, b_ref, o_ref, xa_ref):
        # Compute xa = (x @ A) * scale only on the first inner (n == 0) step of
        # each m tile; the VMEM scratch carries it across the remaining n steps.
        @pl.when(pl.program_id(1) == 0)
        def _():
            xa = jnp.dot(x_ref[...], a_ref[...],
                         preferred_element_type=jnp.float32)
            xa_ref[...] = xa * scale

        # (tm, rp) @ (rp, tn) -> (tm, tn); f32 accumulation on the MXU.  Only
        # the tiny xa intermediate is cast down to the weight dtype.
        z = jnp.dot(xa_ref[...].astype(b_ref.dtype), b_ref[...],
                    preferred_element_type=jnp.float32)
        o_ref[...] = z.astype(o_ref.dtype)

    return kernel


def lora_forward(x: jax.Array, A: jax.Array, B: jax.Array,
                 alpha: float, rank: int,
                 *, block_m: int = 512, block_n: int = 2048,
                 vmem_budget_bytes: int = 48 * 1024 * 1024) -> jax.Array:
    """Pallas implementation of LoRALayer.forward.

    x: (..., d_in)   A: (d_in, rank)   B: (rank, d_out)
    returns: (..., d_out)
    """
    assert x.ndim >= 2, "Input tensor must have at least 2 dimensions."
    d_in, r = A.shape
    r2, d_out = B.shape
    assert r == r2 and r == rank
    assert x.shape[-1] == d_in, (
        f"Expected the last dimension of input to be {d_in}, got {x.shape[-1]}."
    )

    lead_shape = x.shape[:-1]
    M = math.prod(lead_shape)
    x2d = x.reshape(M, d_in)
    scale = float(alpha) / float(rank)

    # Uniform dtype: tiny weights are cast to the activation dtype so both
    # matmuls feed the MXU in one dtype (f32 accumulation only).  ~Free.
    dt = x.dtype
    A = A.astype(dt)
    B = B.astype(dt)
    itemsize = jnp.dtype(dt).itemsize

    # Zero-pad rank to a sublane multiple (8 for 4-byte dtypes, 16 for 2-byte).
    # Padded A columns are zero -> padded xa lanes are zero -> exact result.
    pad_to = 16 if itemsize == 2 else 8
    rp = ((r + pad_to - 1) // pad_to) * pad_to
    if rp != r:
        A = jnp.pad(A, ((0, 0), (0, rp - r)))
        B = jnp.pad(B, ((0, rp - r), (0, 0)))

    # Tile selection: full extent for small dims, otherwise (8,128)-aligned
    # tiles, shrunk (tn first, then tm) to fit the scoped-VMEM budget.
    tm = M if M <= block_m else block_m          # block_m is a multiple of 8
    tn = d_out if d_out <= block_n else block_n  # block_n is a multiple of 128

    def footprint(tm_, tn_):
        # Double-buffered x/B/out tiles + resident A + xa f32 scratch.
        return ((2 * (tm_ * d_in + rp * tn_ + tm_ * tn_) + 2 * d_in * rp)
                * itemsize + tm_ * rp * 4)

    while footprint(tm, tn) > vmem_budget_bytes and tn % 256 == 0 and tn > 256:
        tn //= 2
    while footprint(tm, tn) > vmem_budget_bytes and tm % 16 == 0 and tm > 16:
        tm //= 2

    grid = (pl.cdiv(M, tm), pl.cdiv(d_out, tn))  # n is the innermost axis

    # Explicit scoped-VMEM limit: at least the usual 32 MiB default, raised to
    # cover the real footprint (+headroom), capped below physical VMEM.
    vmem_limit = int(min(max(footprint(tm, tn) + (4 << 20), 32 << 20),
                         100 << 20))

    # Advisory cost model: mem-bound op with rank-factored FLOPs.
    flops = 2 * M * rp * (d_in + d_out)
    bytes_accessed = (M * d_in + M * d_out + d_in * rp + rp * d_out) * itemsize
    cost = pl.CostEstimate(flops=flops, transcendentals=0,
                           bytes_accessed=bytes_accessed)

    out2d = pl.pallas_call(
        _lora_kernel(scale),
        out_shape=jax.ShapeDtypeStruct((M, d_out), x.dtype),
        grid_spec=pltpu.PrefetchScalarGridSpec(
            num_scalar_prefetch=0,
            grid=grid,
            in_specs=[
                # x tile depends only on m -> reused in VMEM across inner n.
                pl.BlockSpec((tm, d_in), lambda m, n: (m, 0)),
                # A fully resident (constant block index -> fetched once).
                pl.BlockSpec((d_in, rp), lambda m, n: (0, 0)),
                # B tiled along d_out only.
                pl.BlockSpec((rp, tn), lambda m, n: (0, n)),
            ],
            out_specs=pl.BlockSpec((tm, tn), lambda m, n: (m, n)),
            # f32 scratch carrying (x@A)*scale across the inner n loop.
            scratch_shapes=[pltpu.VMEM((tm, rp), jnp.float32)],
        ),
        compiler_params=pltpu.CompilerParams(
            # m parallel (megacore splits disjoint x/output rows on v7x),
            # n arbitrary (required for the xa scratch carry).
            dimension_semantics=("parallel", "arbitrary"),
            vmem_limit_bytes=vmem_limit,
        ),
        cost_estimate=cost,
    )(x2d, A, B)

    return out2d.reshape(*lead_shape, d_out)


if __name__ == "__main__":
    key = jax.random.PRNGKey(0)
    k_x, k_a, k_b, k_x2, k_a2, k_b2 = jax.random.split(key, 6)

    # --- Test 1: small shapes mirroring the PyTorch module, with a nonzero B
    # so the reassociated two-matmul path and alpha/rank scale are validated.
    batch, seq = 2, 8
    d_in, d_out, rank, alpha = 32, 32, 4, 8.0

    x = jax.random.normal(k_x, (batch, seq, d_in), dtype=jnp.float32)
    A = 0.01 * jax.random.normal(k_a, (d_in, rank), dtype=jnp.float32)
    B = jax.random.normal(k_b, (rank, d_out), dtype=jnp.float32)

    z = jax.block_until_ready(lora_forward(x, A, B, alpha=alpha, rank=rank))
    z_ref = x @ ((A @ B) * (alpha / rank))
    assert z.shape == (batch, seq, d_out)
    assert jnp.allclose(z, z_ref, atol=1e-5, rtol=1e-5)

    # --- Test 2: tiled grid with partial tiles on M and N; exercises the
    # xa-scratch carry across multiple inner n steps (pl.when path).
    batch2, seq2 = 4, 160
    d_in2, d_out2, rank2, alpha2 = 32, 384, 4, 16.0

    x2 = jax.random.normal(k_x2, (batch2, seq2, d_in2), dtype=jnp.float32)
    A2 = 0.01 * jax.random.normal(k_a2, (d_in2, rank2), dtype=jnp.float32)
    B2 = jax.random.normal(k_b2, (rank2, d_out2), dtype=jnp.float32)

    z2 = jax.block_until_ready(
        lora_forward(x2, A2, B2, alpha=alpha2, rank=rank2,
                     block_m=256, block_n=128))
    z2_ref = x2 @ ((A2 @ B2) * (alpha2 / rank2))
    assert z2.shape == (batch2, seq2, d_out2)
    assert jnp.allclose(z2, z2_ref, atol=1e-4, rtol=1e-4)

    # --- Test 3: bf16 activations + weights (looser tolerance: reassociated
    # math and the bf16 xa downcast round differently than the reference).
    xb = x.astype(jnp.bfloat16)
    Ab = A.astype(jnp.bfloat16)
    Bb = B.astype(jnp.bfloat16)
    zb = jax.block_until_ready(lora_forward(xb, Ab, Bb, alpha=alpha, rank=rank))
    zb_ref = (xb.astype(jnp.float32)
              @ ((Ab.astype(jnp.float32) @ Bb.astype(jnp.float32))
                 * (alpha / rank)))
    assert zb.dtype == jnp.bfloat16
    assert jnp.allclose(zb.astype(jnp.float32), zb_ref, atol=2e-2, rtol=2e-2)

    print("KERNEL_OK")
</pallas_src>

<mosaic_0001>
module attributes {stable_mosaic.version = 11 : i64} {
  func.func @kernel(%arg0: i32, %arg1: i32, %arg2: memref<16x32xf32, #tpu.memory_space<vmem>>, %arg3: memref<32x8xf32, #tpu.memory_space<vmem>>, %arg4: memref<8x32xf32, #tpu.memory_space<vmem>>, %arg5: memref<16x32xf32, #tpu.memory_space<vmem>>, %arg6: memref<16x8xf32, #tpu.memory_space<vmem>>) attributes {dimension_semantics = [#tpu.dimension_semantics<parallel>, #tpu.dimension_semantics<arbitrary>], iteration_bounds = array<i64: 1, 1>, scalar_prefetch = 0 : i64, scratch_operands = 1 : i64, tpu.core_type = #tpu.core_type<tc>, window_params = [{transform_indices = @transform_0, window_bounds = array<i64: 16, 32>}, {pipeline_mode = #tpu.pipeline_mode<synchronous>, transform_indices = @transform_1, window_bounds = array<i64: 32, 8>}, {transform_indices = @transform_2, window_bounds = array<i64: 8, 32>}, {transform_indices = @transform_3, window_bounds = array<i64: 16, 32>}]} {
    %c0_i32 = arith.constant 0 : i32
    %0 = arith.cmpi eq, %arg1, %c0_i32 : i32
    %1 = arith.extui %0 : i1 to i32
    %c0_i32_0 = arith.constant 0 : i32
    %2 = arith.cmpi ne, %1, %c0_i32_0 : i32
    scf.if %2 {
      %c0_6 = arith.constant 0 : index
      %c0_7 = arith.constant 0 : index
      %7 = vector.load %arg2[%c0_6, %c0_7] : memref<16x32xf32, #tpu.memory_space<vmem>>, vector<16x32xf32>
      %c0_8 = arith.constant 0 : index
      %c0_9 = arith.constant 0 : index
      %8 = vector.load %arg3[%c0_8, %c0_9] : memref<32x8xf32, #tpu.memory_space<vmem>>, vector<32x8xf32>
      %cst_10 = arith.constant dense<0.000000e+00> : vector<16x8xf32>
      %9 = tpu.matmul %7, %8, %cst_10 {dimension_numbers = #tpu.dot_dimension_numbers<[1], [0], [0], [1], [0, 0, 1, 1], [], []>} : vector<16x32xf32>, vector<32x8xf32>, vector<16x8xf32> -> vector<16x8xf32>
      %cst_11 = arith.constant 2.000000e+00 : f32
      %10 = vector.broadcast %cst_11 : f32 to vector<16x8xf32>
      %11 = arith.mulf %9, %10 : vector<16x8xf32>
      %c0_12 = arith.constant 0 : index
      %c0_13 = arith.constant 0 : index
      %12 = vector.load %arg6[%c0_12, %c0_13] : memref<16x8xf32, #tpu.memory_space<vmem>>, vector<16x8xf32>
      tpu.vector_store %arg6[%c0_12, %c0_13], %11 {strides = array<i32>} : memref<16x8xf32, #tpu.memory_space<vmem>>, vector<16x8xf32>,
    } else {
    }
    %c0 = arith.constant 0 : index
    %c0_1 = arith.constant 0 : index
    %3 = vector.load %arg6[%c0, %c0_1] : memref<16x8xf32, #tpu.memory_space<vmem>>, vector<16x8xf32>
    %c0_2 = arith.constant 0 : index
    %c0_3 = arith.constant 0 : index
    %4 = vector.load %arg4[%c0_2, %c0_3] : memref<8x32xf32, #tpu.memory_space<vmem>>, vector<8x32xf32>
    %cst = arith.constant dense<0.000000e+00> : vector<16x32xf32>
    %5 = tpu.matmul %3, %4, %cst {dimension_numbers = #tpu.dot_dimension_numbers<[1], [0], [0], [1], [0, 0, 1, 1], [], []>} : vector<16x8xf32>, vector<8x32xf32>, vector<16x32xf32> -> vector<16x32xf32>
    %c0_4 = arith.constant 0 : index
    %c0_5 = arith.constant 0 : index
    %6 = vector.load %arg5[%c0_4, %c0_5] : memref<16x32xf32, #tpu.memory_space<vmem>>, vector<16x32xf32>
    tpu.vector_store %arg5[%c0_4, %c0_5], %5 {strides = array<i32>} : memref<16x32xf32, #tpu.memory_space<vmem>>, vector<16x32xf32>,
    return
  }
  func.func @transform_0(%arg0: i32, %arg1: i32) -> (i32, i32) {
    %c0_i32 = arith.constant 0 : i32
    %c0_i32_0 = arith.constant 0 : i32
    return %arg0, %c0_i32 : i32, i32
  }
  func.func @transform_1(%arg0: i32, %arg1: i32) -> (i32, i32) {
    %c0_i32 = arith.constant 0 : i32
    %c0_i32_0 = arith.constant 0 : i32
    %c0_i32_1 = arith.constant 0 : i32
    return %c0_i32, %c0_i32_0 : i32, i32
  }
  func.func @transform_2(%arg0: i32, %arg1: i32) -> (i32, i32) {
    %c0_i32 = arith.constant 0 : i32
    %c0_i32_0 = arith.constant 0 : i32
    return %c0_i32, %arg1 : i32, i32
  }
  func.func @transform_3(%arg0: i32, %arg1: i32) -> (i32, i32) {
    %c0_i32 = arith.constant 0 : i32
    return %arg0, %arg1 : i32, i32
  }
}

</mosaic_0001>

<bundles_post_ra>
// kernel: tpu_custom_call.1
= control target key start
LH: loop header
LB: loop body
LE: loop exit
PB: predicated region body
PF: predicated region fallthrough
CT: control target
= control target key end

     0   :  { %vm25_vm0 = vcmask 261120   ;;  %s321_s0 = inlined_call_operand.vmem [shape: f32[16,32], index: 0, kind: input, shape index: {}]   ;;  %s322_s1 = inlined_call_operand.vmem [shape: f32[32,8], index: 1, kind: input, shape index: {}]   ;;  %s323_s2 = inlined_call_operand.vmem [shape: f32[8,32], index: 2, kind: input, shape index: {}]   ;;  %s324_s3 = inlined_call_operand.hbm [shape: f32[16,32], index: 3, kind: output, shape index: {}]  }
   0x1   :  { %v24_v0 = vld [vmem:[%s322_s1 + $0x18] sm:$0xff]  ;;  %v23_v1 = vld [vmem:[%s322_s1 + $0x10] sm:$0xff]  ;;  %v19_v2 = vld [vmem:[%s321_s0] sm:$0xff] }
   0x2   :  { %229 = vmatprep.subr.mxu0 %v24_v0  ;;  %v22_v3 = vld [vmem:[%s322_s1 + $0x8] sm:$0xff]  ;;  %237 = vmatprep.mubr.msk.f32.mxu0 %vm25_vm0, %v19_v2 }
   0x3   :  { %230 = vmatpush3.msra.mxu0 %v24_v0 }
   0x4   :  { %8 = vsyncpa [#allocation4], 0  ;;  %231 = vmatprep.subr.mxu0 %v23_v1  ;;  %v21_v4 = vld [vmem:[%s322_s1] sm:$0xff]  ;;  %v20_v5 = vld [vmem:[%s321_s0 + $0x8] sm:$0xff]  ;;  %vm109_vm1 = vcmask 64512   ;;  %s270_s0 = smov [#allocation3]  }
   0x5   :  { %232 = vmatpush3.msra.mxu0 %v23_v1  ;;  %v114_v6 = vld [vmem:[%s323_s2] sm:$0xff]  ;;  %s205_s1 = sshll.u32 %s270_s0, 4  ;;  %s206_s1 = int_to_ptr.vmem [resolvable:$true] %s205_s1 }
   0x6   :  { %233 = vmatprep.subr.mxu0 %v22_v3  ;;  %240 = vmatprep.subr.mxu1 %v114_v6  ;;  %s248_s2 = scalar_lea.vmem %s206_s1, 256  ;;  %p253_p1 = scmp.lt.s32.totalorder %s206_s1, %s206_s1 }
   0x7   :  { %234 = vmatpush3.msra.mxu0 %v22_v3  ;;  %241 = vmatpush3.msra.mxu1 %v114_v6  ;;  %p249_p0 = scmp.ne.s32.totalorder %s206_s1, %s248_s2  ;;  %p254_p2 = scmp.lt.s32.totalorder %s248_s2, %s248_s2 }
   0x8   :  { %235 = vmatprep.subr.mxu0 %v21_v4 }
   0x9   :  { %236 = vmatpush3.msra.mxu0 %v21_v4  ;;  %p255_p3 = por %p254_p2, %p253_p1 }
   0xa   :  { %238 = vmatmul.mubr.msk.f32.vlgmr.msra.gmra.mxu0 %vm25_vm0, %v20_v5 }
   0xb   :  { %p256_p4 = pnand %p255_p3, %p249_p0 }
  0xca   :  { %v239_v7 = vpop.f32.mrf.mxu0 }
  0xcb   :  { %v108_v8 = vmul.f32 2.0, %v239_v7 }
  0xcc   :  { %v98_v9 = vpop.f32.mrf.mxu0 }
  0xcd   :  { %111 = vst.msk [vmem:[#allocation2 + $0x8] sm:$0xff] %vm109_vm1, %v108_v8  ;;  %v107_v10 = vmul.f32 2.0, %v98_v9 }
  0xcf   :  { %110 = vst.msk [vmem:[#allocation2] sm:$0xff] %vm109_vm1, %v107_v10 }
  0xd4   :  { %v113_v12 = vld [vmem:[#allocation2 + $0x8] sm:$0xff] }
  0xd6   :  { %v112_v11 = vld [vmem:[#allocation2] sm:$0xff] }
  0xd7   :  { %242 = vmatprep.mubr.msk.f32.mxu1 %vm109_vm1, %v112_v11 }
  0xd8   :  { %243 = vmatmul.mubr.msk.f32.vlgmr.msra.gmra.mxu1 %vm109_vm1, %v113_v12 }
 0x198   :  { %v244_v13 = vpop.f32.mrf.mxu1 }
 0x199   :  { %199 = vst.msk [vmem:[#allocation3 + $0x8] sm:$0xff] %vm25_vm0, %v244_v13 }
 0x19a   :  { %v188_v14 = vpop.f32.mrf.mxu1 }
 0x19b   :  { %198 = vst.msk [vmem:[#allocation3] sm:$0xff] %vm25_vm0, %v188_v14 }
 0x19c   :  { %259 = shalt.err (!%p256_p4)
}
 0x19d   :  { %s271_s26 = smov 128   ;;  %s272_s27 = smov 8  }
 0x19e   :  { %211 = dma.vmem_to_hbm [thread:$0]  %s206_s1, 256, %s324_s3, [#allocation4], %s271_s26, %s271_s26, %s272_s27  }
 0x19f   :  { %268 = dma.done.wait [#allocation4], 256  }
 0x1a0   :  { %269 = vsyncadd [#allocation4], 4294967040 }
 0x1a1   :  { %215 = vsyncpa [#allocation4], 1 }

</bundles_post_ra>
